<compile_context>
chip_gen: v7x
topology: tpu7x:2x2x1
jax: 0.10.0
libtpu: 0.0.40
codegen_flags: <defaults>
</compile_context>

<pallas_src>
import math

import numpy as np
import jax
import jax.numpy as jnp
from jax.experimental import pallas as pl
from jax.experimental.pallas import tpu as pltpu

EPS = 1e-12            # PyTorch F.normalize default eps (clamp_min on the norm)
EPS_SQ = EPS * EPS     # clamp(norm, eps) == rsqrt(clamp(sum_sq, eps^2)) scaling

_TILE_TARGET_BYTES = 3 * 1024 * 1024   # per in/out tile (2-4 MiB HBM-roofline sweet spot)
_VMEM_LIMIT = 48 * 1024 * 1024         # scoped VMEM request; <= ~48 MiB keeps v7x safe
_MIN_GRID_STEPS = 4                    # v7x megacore: 2 TCs x >=2 steps each
_MAX_PACKED_KD = 1024                  # cap packed row width (keeps seg matmuls tiny)


def _sublane(dtype) -> int:
    # second-minor granularity of the (8,128) tiling per element width
    return {4: 8, 2: 16, 1: 32}.get(jnp.dtype(dtype).itemsize, 8)


def _cdiv(a, b):
    return -(-a // b)


def _round_up(a, m):
    return _cdiv(a, m) * m


def _pick_row_tile(np_rows: int, bytes_per_row: int, sub: int) -> int:
    """Byte-targeted row tile, sublane aligned, with >=4 (even) grid steps when possible."""
    tile = max(sub, (_TILE_TARGET_BYTES // max(1, bytes_per_row)) // sub * sub)
    if tile >= np_rows:
        # whole problem would be one resident block: split so both v7x cores work
        if np_rows >= _MIN_GRID_STEPS * sub:
            tile = _round_up(_cdiv(np_rows, _MIN_GRID_STEPS), sub)
        elif np_rows >= 2 * sub:
            tile = _round_up(_cdiv(np_rows, 2), sub)
        else:
            return np_rows                              # tiny: single full-dim block
    # best-effort even step count (megacore balance)
    steps = _cdiv(np_rows, tile)
    if steps > 1 and steps % 2 == 1:
        cand = max(sub, _round_up(_cdiv(np_rows, steps + 1), sub))
        if _cdiv(np_rows, cand) % 2 == 0:
            tile = cand
    # keep at least _MIN_GRID_STEPS steps when the problem is big enough
    if _cdiv(np_rows, tile) < _MIN_GRID_STEPS and np_rows >= _MIN_GRID_STEPS * sub:
        tile = _round_up(_cdiv(np_rows, _MIN_GRID_STEPS), sub)
    return tile


def _make_seg_matrices(d: int, k: int):
    """0/1 segment matrices for k packed rows of width d (precomputed, loop-invariant)."""
    kd = k * d
    lane = np.arange(kd)[:, None]
    grp = np.arange(k)[None, :]
    seg = (lane // d == grp).astype(np.float32)          # (kd, k): segmented sum
    seg_t = np.ascontiguousarray(seg.T)                  # (k, kd): segmented broadcast
    return jnp.asarray(seg), jnp.asarray(seg_t)


def _make_kernel(k: int):
    """Kernel body for a (tm, k*d) block; each kernel row packs k original rows."""
    if k == 1:
        def kernel(x_ref, o_ref):
            xf = x_ref[...].astype(jnp.float32)                       # f32 reduction
            ssq = jnp.sum(xf * xf, axis=1, keepdims=True)             # (tm, 1)  XLU
            inv = jax.lax.rsqrt(jnp.maximum(ssq, EPS_SQ))             # EUP
            o_ref[...] = (xf * inv).astype(o_ref.dtype)               # single f32 VPU mul
        return kernel

    def kernel(x_ref, seg_ref, segt_ref, o_ref):
        xf = x_ref[...].astype(jnp.float32)
        sq = xf * xf
        # Segmented sum over groups of d consecutive lanes via two tiny MXU matmuls
        # (MXU slot is idle in this mem-bound kernel); seg matrices are resident
        # VMEM inputs, precision pinned so the f32 sum-of-squares stays accurate.
        ssq = jnp.dot(sq, seg_ref[...], preferred_element_type=jnp.float32,
                      precision=jax.lax.Precision.HIGHEST)            # (tm, k)
        inv = jax.lax.rsqrt(jnp.maximum(ssq, EPS_SQ))                 # (tm, k)
        scale = jnp.dot(inv, segt_ref[...], preferred_element_type=jnp.float32,
                        precision=jax.lax.Precision.HIGHEST)          # (tm, kd)
        o_ref[...] = (xf * scale).astype(o_ref.dtype)
    return kernel


def normalize(x, *, row_tile=None):
    """F.normalize(x, p=2, dim=1) for a 2-D (N, D) input."""
    assert x.ndim == 2, "2-D (batch, features) path; use normalize_module for rank > 2"
    N, D = x.shape
    out_dtype = x.dtype
    itemsize = jnp.dtype(x.dtype).itemsize
    sub = _sublane(x.dtype)

    # ---- lane-dense packing: fold k rows so the output last dim is a multiple of 128.
    #      Cap kd so the segmented-sum fixup stays trivially cheap.
    k = 128 // math.gcd(D, 128)
    if k > 1 and k * D > _MAX_PACKED_KD:
        k = 1
    xk = x
    pad_k = (-N) % k
    if pad_k:                                   # zero rows normalize to zero, sliced off
        xk = jnp.pad(xk, ((0, pad_k), (0, 0)))
    Nk = N + pad_k
    Np, KD = Nk // k, k * D
    xp = xk.reshape(Np, KD)

    # ---- row tile: byte-targeted, >=4 even grid steps when possible
    if row_tile is None:
        row_tile = _pick_row_tile(Np, KD * itemsize, sub)
    else:
        row_tile = min(int(row_tile), Np)
        if row_tile != Np:
            row_tile = max(sub, (row_tile // sub) * sub)   # guard (8,128) rule

    pad_r = (-Np) % row_tile
    if pad_r:
        xp = jnp.pad(xp, ((0, pad_r), (0, 0)))
    n_padded = Np + pad_r
    grid = (n_padded // row_tile,)

    in_arrays = [xp]
    in_specs = [pl.BlockSpec((row_tile, KD), lambda i: (i, 0))]
    if k > 1:
        seg, seg_t = _make_seg_matrices(D, k)
        in_arrays += [seg, seg_t]
        # constant block index -> DMA'd once, stays resident across grid steps
        in_specs += [pl.BlockSpec((KD, k), lambda i: (0, 0)),
                     pl.BlockSpec((k, KD), lambda i: (0, 0))]

    out = pl.pallas_call(
        _make_kernel(k),
        out_shape=jax.ShapeDtypeStruct((n_padded, KD), out_dtype),
        grid_spec=pltpu.PrefetchScalarGridSpec(
            num_scalar_prefetch=0,
            grid=grid,
            in_specs=in_specs,
            out_specs=pl.BlockSpec((row_tile, KD), lambda i: (i, 0)),
        ),
        compiler_params=pltpu.CompilerParams(
            dimension_semantics=("parallel",),
            vmem_limit_bytes=_VMEM_LIMIT,
        ),
    )(*in_arrays)

    out = out[:Np].reshape(Nk, D)
    if pad_k:
        out = out[:N]
    return out


def normalize_module(x):
    """Full module semantics: F.normalize(x, p=2, dim=1) for any rank >= 2."""
    if x.ndim == 2:
        return normalize(x)
    # move dim 1 to the last axis, flatten leading axes, normalize rows, restore
    perm = (0,) + tuple(range(2, x.ndim)) + (1,)
    xt = jnp.transpose(x, perm)
    shp = xt.shape
    out = normalize(xt.reshape(-1, shp[-1])).reshape(shp)
    inv_perm = (0, x.ndim - 1) + tuple(range(1, x.ndim - 1))
    return jnp.transpose(out, inv_perm)


def _reference(x, dim=1):
    xf = x.astype(jnp.float32)
    n = jnp.sqrt(jnp.sum(xf * xf, axis=dim, keepdims=True))
    return (xf / jnp.maximum(n, EPS)).astype(x.dtype)


if __name__ == "__main__":
    key = jax.random.PRNGKey(0)
    k1, k2, k3, k4, k5, k6 = jax.random.split(key, 6)

    checks_2d = [
        # MLP-head style small case: D < 128 exercises lane-dense packing (k=4).
        (jax.random.normal(k1, (8, 32), dtype=jnp.float32), 1e-5, 1e-5),
        # D multiple of 128, split into 4 grid steps.
        (jax.random.normal(k2, (64, 256), dtype=jnp.float32), 1e-5, 1e-5),
        # bf16 with row padding (48 rows -> 32-row tile, padded to 64).
        (jax.random.normal(k3, (48, 384), dtype=jnp.bfloat16), 2e-2, 2e-2),
        # N % k != 0 -> zero-row pad keeps the lane-dense packed path.
        (jax.random.normal(k4, (10, 32), dtype=jnp.float32), 1e-5, 1e-5),
        # kd cap (D=100 -> lcm 3200 > 1024) -> k=1 fallback path.
        (jax.random.normal(k5, (16, 100), dtype=jnp.float32), 1e-5, 1e-5),
    ]

    for x, atol, rtol in checks_2d:
        out = jax.block_until_ready(normalize(x))
        ref = _reference(x)
        assert out.shape == x.shape and out.dtype == x.dtype
        assert jnp.allclose(out.astype(jnp.float32), ref.astype(jnp.float32),
                            atol=atol, rtol=rtol), (x.shape, str(x.dtype))

    # dim=1 semantics on a 4-D input (generic F.normalize(x, p=2, dim=1))
    x4 = jax.random.normal(k6, (2, 4, 16, 16), dtype=jnp.float32)
    out4 = jax.block_until_ready(normalize_module(x4))
    ref4 = _reference(x4, dim=1)
    assert out4.shape == x4.shape and out4.dtype == x4.dtype
    assert jnp.allclose(out4, ref4, atol=1e-5, rtol=1e-5)

    print("KERNEL_OK")
</pallas_src>

<mosaic_0001>
module attributes {stable_mosaic.version = 11 : i64} {
  func.func @kernel(%arg0: i32, %arg1: memref<2x128xf32, #tpu.memory_space<vmem>>, %arg2: memref<128x4xf32, #tpu.memory_space<vmem>>, %arg3: memref<4x128xf32, #tpu.memory_space<vmem>>, %arg4: memref<2x128xf32, #tpu.memory_space<vmem>>) attributes {dimension_semantics = [#tpu.dimension_semantics<parallel>], iteration_bounds = array<i64: 1>, scalar_prefetch = 0 : i64, scratch_operands = 0 : i64, tpu.core_type = #tpu.core_type<tc>, window_params = [{transform_indices = @transform_0, window_bounds = array<i64: 2, 128>}, {pipeline_mode = #tpu.pipeline_mode<synchronous>, transform_indices = @transform_1, window_bounds = array<i64: 128, 4>}, {pipeline_mode = #tpu.pipeline_mode<synchronous>, transform_indices = @transform_2, window_bounds = array<i64: 4, 128>}, {transform_indices = @transform_3, window_bounds = array<i64: 2, 128>}]} {
    %c0 = arith.constant 0 : index
    %c0_0 = arith.constant 0 : index
    %0 = vector.load %arg1[%c0, %c0_0] : memref<2x128xf32, #tpu.memory_space<vmem>>, vector<2x128xf32>
    %1 = arith.mulf %0, %0 : vector<2x128xf32>
    %c0_1 = arith.constant 0 : index
    %c0_2 = arith.constant 0 : index
    %2 = vector.load %arg2[%c0_1, %c0_2] : memref<128x4xf32, #tpu.memory_space<vmem>>, vector<128x4xf32>
    %cst = arith.constant dense<0.000000e+00> : vector<2x4xf32>
    %3 = tpu.matmul %1, %2, %cst {dimension_numbers = #tpu.dot_dimension_numbers<[1], [0], [0], [1], [0, 0, 1, 1], [], []>, precision = #tpu.contract_precision<fp32>} : vector<2x128xf32>, vector<128x4xf32>, vector<2x4xf32> -> vector<2x4xf32>
    %cst_3 = arith.constant 1.000000e-24 : f32
    %4 = vector.broadcast %cst_3 : f32 to vector<2x4xf32>
    %5 = arith.maximumf %3, %4 : vector<2x4xf32>
    %6 = math.rsqrt %5 : vector<2x4xf32>
    %c0_4 = arith.constant 0 : index
    %c0_5 = arith.constant 0 : index
    %7 = vector.load %arg3[%c0_4, %c0_5] : memref<4x128xf32, #tpu.memory_space<vmem>>, vector<4x128xf32>
    %cst_6 = arith.constant dense<0.000000e+00> : vector<2x128xf32>
    %8 = tpu.matmul %6, %7, %cst_6 {dimension_numbers = #tpu.dot_dimension_numbers<[1], [0], [0], [1], [0, 0, 1, 1], [], []>, precision = #tpu.contract_precision<fp32>} : vector<2x4xf32>, vector<4x128xf32>, vector<2x128xf32> -> vector<2x128xf32>
    %9 = arith.mulf %0, %8 : vector<2x128xf32>
    %c0_7 = arith.constant 0 : index
    %c0_8 = arith.constant 0 : index
    %10 = vector.load %arg4[%c0_7, %c0_8] : memref<2x128xf32, #tpu.memory_space<vmem>>, vector<2x128xf32>
    tpu.vector_store %arg4[%c0_7, %c0_8], %9 {strides = array<i32>} : memref<2x128xf32, #tpu.memory_space<vmem>>, vector<2x128xf32>,
    return
  }
  func.func @transform_0(%arg0: i32) -> (i32, i32) {
    %c0_i32 = arith.constant 0 : i32
    %c0_i32_0 = arith.constant 0 : i32
    return %arg0, %c0_i32 : i32, i32
  }
  func.func @transform_1(%arg0: i32) -> (i32, i32) {
    %c0_i32 = arith.constant 0 : i32
    %c0_i32_0 = arith.constant 0 : i32
    %c0_i32_1 = arith.constant 0 : i32
    return %c0_i32, %c0_i32_0 : i32, i32
  }
  func.func @transform_2(%arg0: i32) -> (i32, i32) {
    %c0_i32 = arith.constant 0 : i32
    %c0_i32_0 = arith.constant 0 : i32
    %c0_i32_1 = arith.constant 0 : i32
    return %c0_i32, %c0_i32_0 : i32, i32
  }
  func.func @transform_3(%arg0: i32) -> (i32, i32) {
    %c0_i32 = arith.constant 0 : i32
    %c0_i32_0 = arith.constant 0 : i32
    return %arg0, %c0_i32 : i32, i32
  }
}

</mosaic_0001>

<bundles_post_ra>
// kernel: tpu_custom_call.1
= control target key start
LH: loop header
LB: loop body
LE: loop exit
PB: predicated region body
PF: predicated region fallthrough
CT: control target
= control target key end

     0   :  { %v1693_v3 = vmov 0.0|0.0   ;;  %vm1694_vm0 = vmmov 0   ;;  %v1695_v11 = vmov 0.0   ;;  %s2069_s0 = inlined_call_operand.vmem [shape: f32[2,128], index: 0, kind: input, shape index: {}]   ;;  %s2070_s1 = inlined_call_operand.vmem [shape: f32[128,4], index: 1, kind: input, shape index: {}]   ;;  %s2071_s2 = inlined_call_operand.vmem [shape: f32[4,128], index: 2, kind: input, shape index: {}]   ;;  %s2072_s3 = inlined_call_operand.hbm [shape: f32[2,128], index: 3, kind: output, shape index: {}]  }
   0x1   :  { %v17_v0 = vld [vmem:[%s2070_s1] sm:$0xff]  ;;  %v18_v1 = vld [vmem:[%s2070_s1 + $0x8] sm:$0xff]  ;;  %v19_v2 = vld [vmem:[%s2070_s1 + $0x10] sm:$0xff]  ;;  %1501 = vmatprep.subr.bf16.mxu1 %v1693_v3  ;;  %1573 = vmatprep.subr.bf16.mxu0 %v1693_v3 }
   0x2   :  { %v34_v4 = vand.u32 4294901760, %v17_v0  ;;  %v37_v5 = vand.u32 4294901760, %v18_v1  ;;  %v20_v6 = vld [vmem:[%s2070_s1 + $0x18] sm:$0xff]  ;;  %v40_v7 = vand.u32 4294901760, %v19_v2  ;;  %v1734_v9 = vld [vmem:[%s2070_s1 + $0x20] sm:$0xff]  ;;  %v1739_v10 = vld [vmem:[%s2070_s1 + $0x28] sm:$0xff]  ;;  %1293 = vmatprep.mubr.msk.f32.mxu1 %vm1694_vm0, %v1695_v11  ;;  %1398 = vmatprep.mubr.msk.f32.mxu0 %vm1694_vm0, %v1695_v11 }
   0x3   :  { %v43_v8 = vand.u32 4294901760, %v20_v6  ;;  %v46_v14 = vand.u32 4294901760, %v1734_v9  ;;  %v49_v15 = vand.u32 4294901760, %v1739_v10  ;;  %v1758_v16 = vld [vmem:[%s2070_s1 + $0x30] sm:$0xff]  ;;  %v1763_v17 = vld [vmem:[%s2070_s1 + $0x38] sm:$0xff] }
   0x4   :  { %v1745_v12 = vpack.c.bf16 %v37_v5, %v34_v4 }
   0x5   :  { %v1749_v13 = vpack.c.bf16 %v43_v8, %v40_v7 }
   0x6   :  { %1503 = vmatpush3.bf16.msra.mxu1 %v1745_v12  ;;  %1575 = vmatpush3.bf16.msra.mxu0 %v1745_v12 }
   0x7   :  { %1504 = vmatprep.subr.bf16.mxu1 %v1693_v3  ;;  %1576 = vmatprep.subr.bf16.mxu0 %v1693_v3 }
   0x8   :  { %8 = vsyncpa [#allocation3], 0  ;;  %v1767_v18 = vpack.c.bf16 %v49_v15, %v46_v14  ;;  %v52_v19 = vand.u32 4294901760, %v1758_v16  ;;  %v55_v20 = vand.u32 4294901760, %v1763_v17  ;;  %v1774_v21 = vld [vmem:[%s2069_s0] sm:$0x3]  ;;  %v1808_v30 = vsub.f32 %v17_v0, %v34_v4 }
   0x9   :  { %v1781_v22 = vld [vmem:[%s2070_s1 + $0x40] sm:$0xff]  ;;  %v1786_v23 = vld [vmem:[%s2070_s1 + $0x48] sm:$0xff]  ;;  %v16_v24 = vmul.f32 %v1774_v21, %v1774_v21  ;;  %v1801_v28 = vld [vmem:[%s2070_s1 + $0x50] sm:$0xff]  ;;  %v1812_v32 = vsub.f32 %v18_v1, %v37_v5  ;;  %v1832_v38 = vsub.f32 %v19_v2, %v40_v7  ;;  %v1834_v39 = vsub.f32 %v20_v6, %v43_v8 }
   0xa   :  { %1506 = vmatpush3.bf16.msra.mxu1 %v1749_v13  ;;  %1578 = vmatpush3.bf16.msra.mxu0 %v1749_v13  ;;  %v1792_v25 = vpack.c.bf16 %v55_v20, %v52_v19  ;;  %v58_v26 = vand.u32 4294901760, %v1781_v22  ;;  %v61_v27 = vand.u32 4294901760, %v1786_v23  ;;  %v1806_v29 = vld [vmem:[%s2070_s1 + $0x58] sm:$0xff]  ;;  %v64_v34 = vand.u32 4294901760, %v1801_v28  ;;  %v1823_v36 = vld [vmem:[%s2070_s1 + $0x60] sm:$0xff]  ;;  %v1830_v37 = vld [vmem:[%s2070_s1 + $0x68] sm:$0xff] }
   0xb   :  { %1507 = vmatprep.subr.bf16.mxu1 %v1693_v3  ;;  %1579 = vmatprep.subr.bf16.mxu0 %v1693_v3  ;;  %v1810_v31 = vand.u32 4294901760, %v16_v24  ;;  %v67_v35 = vand.u32 4294901760, %v1806_v29  ;;  %v70_v40 = vand.u32 4294901760, %v1823_v36  ;;  %v73_v43 = vand.u32 4294901760, %v1830_v37  ;;  %v1852_v44 = vld [vmem:[%s2070_s1 + $0x70] sm:$0xff]  ;;  %v1857_v45 = vld [vmem:[%s2070_s1 + $0x78] sm:$0xff] }
   0xc   :  { %v1816_v33 = vpack.c.bf16 %v61_v27, %v58_v26  ;;  %v127_v46 = vand.u32 4294901760, %v1808_v30  ;;  %v134_v47 = vand.u32 4294901760, %v1812_v32  ;;  %v1864_v48 = vsub.f32 %v1734_v9, %v46_v14 }
   0xd   :  { %v1838_v41 = vsub.f32 %v16_v24, %v1810_v31  ;;  %v1846_v42 = vpack.c.bf16 %v67_v35, %v64_v34  ;;  %v1867_v49 = vsub.f32 %v1739_v10, %v49_v15  ;;  %v76_v50 = vand.u32 4294901760, %v1852_v44 }
   0xe   :  { %1509 = vmatpush3.bf16.msra.mxu1 %v1767_v18  ;;  %1581 = vmatpush3.bf16.msra.mxu0 %v1767_v18  ;;  %v79_v51 = vand.u32 4294901760, %v1857_v45  ;;  %v141_v53 = vand.u32 4294901760, %v1832_v38  ;;  %v1879_v54 = vpack.c.bf16 %v73_v43, %v70_v40  ;;  %v128_v55 = vsub.f32 %v1808_v30, %v127_v46 }
   0xf   :  { %1510 = vmatprep.subr.bf16.mxu1 %v1693_v3  ;;  %1582 = vmatprep.subr.bf16.mxu0 %v1693_v3  ;;  %v116_v52 = vand.u32 4294901760, %v1838_v41  ;;  %v135_v56 = vsub.f32 %v1812_v32, %v134_v47  ;;  %v148_v57 = vand.u32 4294901760, %v1834_v39  ;;  %v1887_v58 = vsub.f32 %v1758_v16, %v52_v19 }
  0x10   :  { %v1890_v59 = vsub.f32 %v1763_v17, %v55_v20  ;;  %v142_v61 = vsub.f32 %v1832_v38, %v141_v53  ;;  %v155_v62 = vand.u32 4294901760, %v1864_v48  ;;  %v162_v63 = vand.u32 4294901760, %v1867_v49 }
  0x11   :  { %v117_v60 = vsub.f32 %v1838_v41, %v116_v52  ;;  %v1902_v0 = vpack.c.bf16 %v79_v51, %v76_v50  ;;  %v129_v1 = vand.u32 4294901760, %v128_v55  ;;  %v136_v2 = vand.u32 4294901760, %v135_v56 }
  0x12   :  { %1512 = vmatpush3.bf16.msra.mxu1 %v1792_v25  ;;  %1584 = vmatpush3.bf16.msra.mxu0 %v1792_v25  ;;  %v149_v4 = vsub.f32 %v1834_v39, %v148_v57  ;;  %v1908_v5 = vsub.f32 %v1781_v22, %v58_v26  ;;  %v1911_v6 = vsub.f32 %v1786_v23, %v61_v27  ;;  %v143_v9 = vand.u32 4294901760, %v142_v61 }
  0x13   :  { %1513 = vmatprep.subr.bf16.mxu1 %v1693_v3  ;;  %1585 = vmatprep.subr.bf16.mxu0 %v1693_v3  ;;  %v1598_v7 = vpack.c.bf16 %v134_v47, %v127_v46  ;;  %v118_v8 = vand.u32 4294901760, %v117_v60  ;;  %v156_v10 = vsub.f32 %v1864_v48, %v155_v62  ;;  %v163_v14 = vsub.f32 %v1867_v49, %v162_v63 }
  0x14   :  { %v1526_v15 = vpack.c.bf16 %v136_v2, %v129_v1  ;;  %v150_v16 = vand.u32 4294901760, %v149_v4  ;;  %v169_v17 = vand.u32 4294901760, %v1887_v58  ;;  %v176_v19 = vand.u32 4294901760, %v1890_v59 }
  0x15   :  { %v1924_v20 = vsub.f32 %v1801_v28, %v64_v34  ;;  %v1929_v22 = vsub.f32 %v1806_v29, %v67_v35  ;;  %v1601_v23 = vpack.c.bf16 %v148_v57, %v141_v53  ;;  %v157_v24 = vand.u32 4294901760, %v156_v10 }
  0x16   :  { %1515 = vmatpush3.bf16.msra.mxu1 %v1816_v33  ;;  %1587 = vmatpush3.bf16.msra.mxu0 %v1816_v33  ;;  %v164_v26 = vand.u32 4294901760, %v163_v14  ;;  %v183_v27 = vand.u32 4294901760, %v1908_v5  ;;  %v1529_v46 = vpack.c.bf16 %v150_v16, %v143_v9  ;;  %v170_v47 = vsub.f32 %v1887_v58, %v169_v17 }
  0x17   :  { %1516 = vmatprep.subr.bf16.mxu1 %v1693_v3  ;;  %1588 = vmatprep.subr.bf16.mxu0 %v1693_v3  ;;  %v177_v28 = vsub.f32 %v1890_v59, %v176_v19  ;;  %v190_v34 = vand.u32 4294901760, %v1911_v6  ;;  %v1940_v29 = vsub.f32 %v1823_v36, %v70_v40  ;;  %v1945_v35 = vsub.f32 %v1830_v37, %v73_v43 }
  0x18   :  { %v1604_v53 = vpack.c.bf16 %v162_v63, %v155_v62  ;;  %v184_v55 = vsub.f32 %v1908_v5, %v183_v27  ;;  %v197_v56 = vand.u32 4294901760, %v1924_v20  ;;  %v171_v36 = vand.u32 4294901760, %v170_v47 }
  0x19   :  { %v178_v40 = vand.u32 4294901760, %v177_v28  ;;  %v191_v57 = vsub.f32 %v1911_v6, %v190_v34  ;;  %v204_v37 = vand.u32 4294901760, %v1929_v22  ;;  %v1960_v43 = vsub.f32 %v1852_v44, %v76_v50 }
  0x1a   :  { %1518 = vmatpush3.bf16.msra.mxu1 %v1846_v42  ;;  %1590 = vmatpush3.bf16.msra.mxu0 %v1846_v42  ;;  %v1965_v60 = vsub.f32 %v1857_v45, %v79_v51  ;;  %v1607_v61 = vpack.c.bf16 %v176_v19, %v169_v17  ;;  %v185_v62 = vand.u32 4294901760, %v184_v55  ;;  %v198_v63 = vsub.f32 %v1924_v20, %v197_v56 }
  0x1b   :  { %1519 = vmatprep.subr.bf16.mxu1 %v1693_v3  ;;  %1591 = vmatprep.subr.bf16.mxu0 %v1693_v3  ;;  %v211_v1 = vand.u32 4294901760, %v1940_v29  ;;  %v1535_v2 = vpack.c.bf16 %v178_v40, %v171_v36  ;;  %v192_v4 = vand.u32 4294901760, %v191_v57  ;;  %v218_v44 = vand.u32 4294901760, %v1945_v35 }
  0x1c   :  { %v1610_v45 = vpack.c.bf16 %v190_v34, %v183_v27  ;;  %v199_v50 = vand.u32 4294901760, %v198_v63  ;;  %v1613_v16 = vpack.c.bf16 %v204_v37, %v197_v56  ;;  %v1553_v55 = vpack.c.bf16 %v1834_v39, %v1832_v38 }
  0x1d   :  { %v212_v51 = vsub.f32 %v1940_v29, %v211_v1  ;;  %v1538_v9 = vpack.c.bf16 %v192_v4, %v185_v62  ;;  %v219_v14 = vsub.f32 %v1945_v35, %v218_v44  ;;  %vm681_vm1 = vcmask 1043456  }
  0x1e   :  { %1521 = vmatpush3.bf16.msra.mxu1 %v1879_v54  ;;  %1593 = vmatpush3.bf16.msra.mxu0 %v1879_v54  ;;  %vm677_vm2 = vcmask 31744  }
  0x1f   :  { %1522 = vmatprep.subr.bf16.mxu1 %v1693_v3  ;;  %1594 = vmatprep.subr.bf16.mxu0 %v1693_v3  ;;  %v213_v17 = vand.u32 4294901760, %v212_v51 }
  0x22   :  { %1524 = vmatpush3.bf16.msra.mxu1 %v1902_v0  ;;  %1596 = vmatpush3.bf16.msra.mxu0 %v1902_v0 }
  0x23   :  { %1525 = vmatprep.subr.bf16.mxu1 %v1693_v3  ;;  %1597 = vmatprep.subr.bf16.mxu0 %v1693_v3 }
  0x25   :  { %1294 = vmatmul.mubr.f32.vlgmr.msra.gmra.mrb[0].mxu1 %v118_v8  ;;  %1399 = vmatmul.mubr.f32.vlgmr.msra.gmra.mrb[0].mxu0 %v116_v52  ;;  %v1532_v52 = vpack.c.bf16 %v164_v26, %v157_v24  ;;  %v225_v8 = vand.u32 4294901760, %v1960_v43 }
  0x26   :  { %1527 = vmatpush3.bf16.msra.mxu1 %v1526_v15  ;;  %1599 = vmatpush3.bf16.msra.mxu0 %v1598_v7  ;;  %v205_v7 = vsub.f32 %v1929_v22, %v204_v37  ;;  %v232_v15 = vand.u32 4294901760, %v1965_v60 }
  0x27   :  { %1528 = vmatprep.subr.bf16.mxu1 %v1693_v3  ;;  %1600 = vmatprep.subr.bf16.mxu0 %v1693_v3  ;;  %v226_v24 = vsub.f32 %v1960_v43, %v225_v8 }
  0x28   :  { %1328 = vmatprep.mubr.msk.f32.mxu1 %vm1694_vm0, %v1695_v11  ;;  %1433 = vmatprep.mubr.msk.f32.mxu0 %vm1694_vm0, %v1695_v11  ;;  %v206_v10 = vand.u32 4294901760, %v205_v7  ;;  %v233_v26 = vsub.f32 %v1965_v60, %v232_v15 }
  0x29   :  { %v227_v47 = vand.u32 4294901760, %v226_v24 }
  0x2a   :  { %1530 = vmatpush3.bf16.msra.mxu1 %v1529_v46  ;;  %1602 = vmatpush3.bf16.msra.mxu0 %v1601_v23  ;;  %v1541_v19 = vpack.c.bf16 %v206_v10, %v199_v50  ;;  %v220_v23 = vand.u32 4294901760, %v219_v14  ;;  %v1616_v46 = vpack.c.bf16 %v218_v44, %v211_v1  ;;  %v234_v28 = vand.u32 4294901760, %v233_v26 }
  0x2b   :  { %1531 = vmatprep.subr.bf16.mxu1 %v1693_v3  ;;  %1603 = vmatprep.subr.bf16.mxu0 %v1693_v3 }
  0x2c   :  { %v1544_v27 = vpack.c.bf16 %v220_v23, %v213_v17  ;;  %v1547_v34 = vpack.c.bf16 %v234_v28, %v227_v47 }
  0x2e   :  { %1533 = vmatpush3.bf16.msra.mxu1 %v1532_v52  ;;  %1605 = vmatpush3.bf16.msra.mxu0 %v1604_v53  ;;  %v1619_v52 = vpack.c.bf16 %v232_v15, %v225_v8  ;;  %v1550_v53 = vpack.c.bf16 %v1812_v32, %v1808_v30  ;;  %v1556_v30 = vpack.c.bf16 %v1867_v49, %v1864_v48 }
  0x2f   :  { %1534 = vmatprep.subr.bf16.mxu1 %v1693_v3  ;;  %1606 = vmatprep.subr.bf16.mxu0 %v1693_v3  ;;  %v1571_v32 = vpack.c.bf16 %v1965_v60, %v1960_v43 }
  0x32   :  { %1536 = vmatpush3.bf16.msra.mxu1 %v1535_v2  ;;  %1608 = vmatpush3.bf16.msra.mxu0 %v1607_v61 }
  0x33   :  { %1537 = vmatprep.subr.bf16.mxu1 %v1693_v3  ;;  %1609 = vmatprep.subr.bf16.mxu0 %v1693_v3 }
  0x36   :  { %1539 = vmatpush3.bf16.msra.mxu1 %v1538_v9  ;;  %1611 = vmatpush3.bf16.msra.mxu0 %v1610_v45 }
  0x37   :  { %1540 = vmatprep.subr.bf16.mxu1 %v1693_v3  ;;  %1612 = vmatprep.subr.bf16.mxu0 %v1693_v3 }
  0x3a   :  { %1542 = vmatpush3.bf16.msra.mxu1 %v1541_v19  ;;  %1614 = vmatpush3.bf16.msra.mxu0 %v1613_v16 }
  0x3b   :  { %1543 = vmatprep.subr.bf16.mxu1 %v1693_v3  ;;  %1615 = vmatprep.subr.bf16.mxu0 %v1693_v3 }
  0x3e   :  { %1545 = vmatpush3.bf16.msra.mxu1 %v1544_v27  ;;  %1617 = vmatpush3.bf16.msra.mxu0 %v1616_v46 }
  0x3f   :  { %1546 = vmatprep.subr.bf16.mxu1 %v1693_v3  ;;  %1618 = vmatprep.subr.bf16.mxu0 %v1693_v3 }
  0x42   :  { %1548 = vmatpush3.bf16.msra.mxu1 %v1547_v34  ;;  %1620 = vmatpush3.bf16.msra.mxu0 %v1619_v52 }
  0x43   :  { %1549 = vmatprep.subr.bf16.mxu1 %v1693_v3  ;;  %1621 = vmatprep.subr.bf16.mxu0 %v1693_v3 }
  0x45   :  { %1329 = vmatmul.mubr.f32.vlgmr.msra.gmra.mrb[0].mxu1 %v1810_v31  ;;  %1434 = vmatmul.mubr.f32.vlgmr.msra.gmra.mrb[0].mxu0 %v1810_v31 }
  0x46   :  { %1551 = vmatpush3.bf16.msra.mxu1 %v1550_v53  ;;  %1623 = vmatpush3.bf16.msra.mxu0 %v1745_v12  ;;  %v1559_v12 = vpack.c.bf16 %v1890_v59, %v1887_v58 }
  0x47   :  { %1552 = vmatprep.subr.bf16.mxu1 %v1693_v3  ;;  %1624 = vmatprep.subr.bf16.mxu0 %v1693_v3 }
  0x48   :  { %1363 = vmatprep.mubr.msk.f32.mxu1 %vm1694_vm0, %v1695_v11  ;;  %1468 = vmatprep.mubr.msk.f32.mxu0 %vm1694_vm0, %v1695_v11 }
  0x4a   :  { %1554 = vmatpush3.bf16.msra.mxu1 %v1553_v55  ;;  %1626 = vmatpush3.bf16.msra.mxu0 %v1749_v13  ;;  %v1562_v13 = vpack.c.bf16 %v1911_v6, %v1908_v5 }
  0x4b   :  { %1555 = vmatprep.subr.bf16.mxu1 %v1693_v3  ;;  %1627 = vmatprep.subr.bf16.mxu0 %v1693_v3 }
  0x4e   :  { %1557 = vmatpush3.bf16.msra.mxu1 %v1556_v30  ;;  %1629 = vmatpush3.bf16.msra.mxu0 %v1767_v18  ;;  %v1565_v18 = vpack.c.bf16 %v1929_v22, %v1924_v20 }
  0x4f   :  { %1558 = vmatprep.subr.bf16.mxu1 %v1693_v3  ;;  %1630 = vmatprep.subr.bf16.mxu0 %v1693_v3 }
  0x52   :  { %1560 = vmatpush3.bf16.msra.mxu1 %v1559_v12  ;;  %1632 = vmatpush3.bf16.msra.mxu0 %v1792_v25  ;;  %v1568_v25 = vpack.c.bf16 %v1945_v35, %v1940_v29 }
  0x53   :  { %1561 = vmatprep.subr.bf16.mxu1 %v1693_v3  ;;  %1633 = vmatprep.subr.bf16.mxu0 %v1693_v3 }
  0x56   :  { %1563 = vmatpush3.bf16.msra.mxu1 %v1562_v13  ;;  %1635 = vmatpush3.bf16.msra.mxu0 %v1816_v33 }
  0x57   :  { %1564 = vmatprep.subr.bf16.mxu1 %v1693_v3  ;;  %1636 = vmatprep.subr.bf16.mxu0 %v1693_v3 }
  0x5a   :  { %1566 = vmatpush3.bf16.msra.mxu1 %v1565_v18  ;;  %1638 = vmatpush3.bf16.msra.mxu0 %v1846_v42 }
  0x5b   :  { %1567 = vmatprep.subr.bf16.mxu1 %v1693_v3  ;;  %1639 = vmatprep.subr.bf16.mxu0 %v1693_v3 }
  0x5e   :  { %1569 = vmatpush3.bf16.msra.mxu1 %v1568_v25  ;;  %1641 = vmatpush3.bf16.msra.mxu0 %v1879_v54 }
  0x5f   :  { %1570 = vmatprep.subr.bf16.mxu1 %v1693_v3  ;;  %1642 = vmatprep.subr.bf16.mxu0 %v1693_v3  ;;  %v676_v3 = vld [vmem:[%s2071_s2] sm:$0xf]  ;;  %s1696_s2 = smov [#allocation2]  }
  0x60   :  { %v683_v33 = vsel %vm681_vm1, %v676_v3, 0  ;;  %s1139_s19 = sshll.u32 %s1696_s2, 4  ;;  %s1140_s19 = int_to_ptr.vmem [resolvable:$true] %s1139_s19 }
  0x61   :  { %v686_v38 = vand.u32 4294901760, %v683_v33  ;;  %s1669_s20 = scalar_lea.vmem %s1140_s19, 32  ;;  %p1674_p1 = scmp.lt.s32.totalorder %s1140_s19, %s1140_s19 }
  0x62   :  { %1572 = vmatpush3.bf16.msra.mxu1 %v1571_v32  ;;  %1644 = vmatpush3.bf16.msra.mxu0 %v1902_v0  ;;  %p1670_p0 = scmp.ne.s32.totalorder %s1140_s19, %s1669_s20  ;;  %p1675_p2 = scmp.lt.s32.totalorder %s1669_s20, %s1669_s20 }
  0x63   :  { %1486 = vmatprep.subr.mxu1 %v1695_v11  ;;  %1471 = vmatprep.subr.mxu0 %v1695_v11  ;;  %v763_v54 = vsub.f32 %v683_v33, %v686_v38 }
  0x64   :  { %p1676_p3 = por %p1675_p2, %p1674_p1 }
  0x65   :  { %1364 = vmatmul.mubr.f32.vlgmr.msra.gmra.mrb[0].mxu1 %v1838_v41  ;;  %1469 = vmatmul.mubr.f32.vlgmr.msra.gmra.mrb[0].mxu0 %v1810_v31  ;;  %v764_v0 = vand.u32 4294901760, %v763_v54 }
  0x66   :  { %1488 = vmatprep.mubr.msk.f32.mxu1 %vm1694_vm0, %v1695_v11  ;;  %1473 = vmatprep.mubr.msk.f32.mxu0 %vm1694_vm0, %v1695_v11  ;;  %p1677_p4 = pnand %p1676_p3, %p1670_p0 }
  0x67   :  { %1487 = vmatpush3.msra.mxu1 %v686_v38  ;;  %1472 = vmatpush3.msra.mxu0 %v686_v38  ;;  %v765_v20 = vsub.f32 %v763_v54, %v764_v0 }
  0x68   :  { %1476 = vmatprep.subr.mxu0 %v1695_v11  ;;  %1491 = vmatprep.subr.mxu1 %v1695_v11 }
  0x69   :  { %v766_v35 = vand.u32 4294901760, %v765_v20 }
 0x138   :  { %v375_v31 = vpop.f32.mrb[0].mxu1  ;;  %v670_v39 = vpop.f32.mrb[0].mxu0 }
 0x139   :  { %v1645_v41 = vadd.f32 %v670_v39, %v375_v31  ;;  %v1365_v42 = vpop.f32.mrb[1].mxu1  ;;  %v1470_v48 = vpop.f32.mrb[1].mxu0 }
 0x13b   :  { %v674_v49 = vmax.f32 %v1645_v41, 1e-24 }
 0x13d   :  { %1667 = vrsqrt.f32 %v674_v49 }
 0x147   :  { %v1668_v58 = vpop.eup %1667 }
 0x148   :  { %v679_v59 = vsel %vm677_vm2, %v1668_v58, 0 }
 0x149   :  { %v751_v5 = vand.u32 4294901760, %v679_v59 }
 0x14b   :  { %v752_v6 = vsub.f32 %v679_v59, %v751_v5 }
 0x14d   :  { %v753_v22 = vand.u32 4294901760, %v752_v6 }
 0x14f   :  { %1489 = vmatmul.mubr.f32.vlgmr.msra.gmra.mrb[2].mxu1 %v753_v22  ;;  %v754_v29 = vsub.f32 %v752_v6, %v753_v22 }
 0x150   :  { %1492 = vmatpush3.msra.mxu1 %v764_v0  ;;  %1493 = vmatprep.mubr.msk.f32.mxu1 %vm1694_vm0, %v1695_v11 }
 0x151   :  { %v755_v56 = vand.u32 4294901760, %v754_v29  ;;  %1496 = vmatprep.subr.mxu1 %v1695_v11 }
 0x153   :  { %1474 = vmatmul.mubr.f32.vlgmr.msra.gmra.mrb[2].mxu0 %v755_v56 }
 0x154   :  { %1477 = vmatpush3.msra.mxu0 %v766_v35  ;;  %1478 = vmatprep.mubr.msk.f32.mxu0 %vm1694_vm0, %v1695_v11 }
 0x155   :  { %1481 = vmatprep.subr.mxu0 %v1695_v11 }
 0x157   :  { %1494 = vmatmul.mubr.f32.vlgmr.msra.gmra.mrb[2].mxu1 %v751_v5 }
 0x158   :  { %1497 = vmatpush3.msra.mxu1 %v686_v38  ;;  %1498 = vmatprep.mubr.msk.f32.mxu1 %vm1694_vm0, %v1695_v11 }
 0x15b   :  { %1479 = vmatmul.mubr.f32.vlgmr.msra.gmra.mrb[2].mxu0 %v751_v5 }
 0x15c   :  { %1482 = vmatpush3.msra.mxu0 %v763_v54  ;;  %1483 = vmatprep.mubr.msk.f32.mxu0 %vm1694_vm0, %v1695_v11 }
 0x15f   :  { %1499 = vmatmul.mubr.f32.vlgmr.msra.gmra.mrb[2].mxu1 %v751_v5 }
 0x163   :  { %1484 = vmatmul.mubr.f32.vlgmr.msra.gmra.mrb[2].mxu0 %v752_v6 }
 0x232   :  { %v1127_v36 = vpop.f32.mrb[2].mxu1 }
 0x233   :  { %v1500_v40 = vpop.f32.mrb[3].mxu1 }
 0x236   :  { %v907_v57 = vpop.f32.mrb[2].mxu0 }
 0x237   :  { %v1646_v37 = vadd.f32 %v1127_v36, %v907_v57  ;;  %v1485_v43 = vpop.f32.mrb[3].mxu0 }
 0x239   :  { %v1131_v60 = vmul.f32 %v1646_v37, %v1774_v21 }
 0x23b   :  { %1132 = vst [vmem:[#allocation2] sm:$0x3] %v1131_v60 }
 0x23c   :  { %1680 = shalt.err (!%p1677_p4)
}
 0x23d   :  { %s1681_s23 = scalar_lea.hbm %s2072_s3, 32 }
 0x23e   :  { %p1682_p5 = scmp.ne.s32.totalorder %s2072_s3, %s1681_s23  ;;  %p1685_p6 = scmp.lt.u32.totalorder %s1681_s23, %s2072_s3 }
 0x240   :  { %p1687_p7 = pnand %p1685_p6, %p1682_p5 }
 0x242   :  { %1690 = shalt.err (!%p1687_p7)
}
 0x243   :  { %1142 = dma.vmem_to_hbm [thread:$0]  %s1140_s19, 32, %s2072_s3, [#allocation3]  }
 0x244   :  { %1691 = dma.done.wait [#allocation3], 32  }
 0x245   :  { %1692 = vsyncadd [#allocation3], 4294967264 }
 0x246   :  { %1146 = vsyncpa [#allocation3], 1 }

</bundles_post_ra>
